<compile_context>
chip_gen: v7x
topology: tpu7x:2x2x1
jax: 0.10.0
libtpu: 0.0.40
codegen_flags: <defaults>
</compile_context>

<pallas_src>
import numpy as np
import jax
import jax.numpy as jnp
from jax.experimental import pallas as pl
from jax.experimental.pallas import tpu as pltpu

_TARGET_BLOCK_BYTES = 2 << 20   # ~2 MiB data blocks
_MAX_BLOCK_ROWS = 2048          # caps lane-padded (rows, 1) bias VMEM buffer at 1 MiB


def _slice_add_kernel(x_ref, b_ref, o_ref):
    # Per-channel bias add; widen to f32 in-kernel (module's weights are f32)
    # and cast back to the output dtype before the store.  For f32 inputs the
    # casts are no-ops the compiler elides.
    x = x_ref[...].astype(jnp.float32)
    b = b_ref[...].astype(jnp.float32)          # (block_rows, 1) -> lane broadcast on VPU
    o_ref[...] = (x + b).astype(o_ref.dtype)


def _choose_block(rows, cols, itemsize, target_bytes=_TARGET_BLOCK_BYTES):
    """Pick a (block_rows, block_cols) tile of ~target_bytes of (lane-padded) VMEM.

    block_cols is the full last dim or a multiple of 128; block_rows is the
    full first dim or a multiple of 8 (TPU (8, 128) tiling constraint).
    """
    padded_cols = -(-cols // 128) * 128          # lane padding in VMEM
    base_rows = rows if rows <= 8 else 8
    if base_rows * padded_cols * itemsize <= target_bytes:
        # Full last dim per block; grow rows toward the target (capped so the
        # lane-padded (rows, 1) bias buffer stays small).
        br = (target_bytes // (padded_cols * itemsize)) // 8 * 8
        br = min(br, _MAX_BLOCK_ROWS)
        block_rows = min(rows, max(base_rows, br))
        return block_rows, cols
    # One 8-row strip is already big: tile the last dim in 128-lane multiples.
    bc = (target_bytes // (base_rows * itemsize)) // 128 * 128
    block_cols = min(cols, max(128, bc))
    return base_rows, block_cols


def slice_add(x1, x2, beta):
    """Pallas SliceAdd.forward: x1 + beta[None, :, None, None].

    x2 (the NxCx1x1 SE output) is unused by the reference PyTorch forward and
    is therefore ignored here as well.
    """
    del x2  # TODO(synk): x2 is accepted but never used by the PyTorch forward.
    N, C, H, W = x1.shape
    rows, cols = N * C, H * W

    x2d = x1.reshape(rows, cols)                                  # free view
    beta = jnp.asarray(beta, dtype=jnp.float32).reshape(C)
    bias = jnp.tile(beta[None, :], (N, 1)).reshape(rows, 1)       # tiny (N*C, 1) f32

    itemsize = jnp.dtype(x1.dtype).itemsize
    block_rows, block_cols = _choose_block(rows, cols, itemsize)
    grid = (pl.cdiv(rows, block_rows), pl.cdiv(cols, block_cols))

    x_bytes = rows * cols * itemsize
    cost = pl.CostEstimate(
        flops=rows * cols,
        transcendentals=0,
        bytes_accessed=2 * x_bytes + rows * 4,
    )

    out2d = pl.pallas_call(
        _slice_add_kernel,
        out_shape=jax.ShapeDtypeStruct((rows, cols), x1.dtype),
        grid_spec=pltpu.PrefetchScalarGridSpec(
            num_scalar_prefetch=0,
            grid=grid,
            in_specs=[
                pl.BlockSpec((block_rows, block_cols), lambda i, j: (i, j)),
                pl.BlockSpec((block_rows, 1), lambda i, j: (i, 0)),
            ],
            out_specs=pl.BlockSpec((block_rows, block_cols), lambda i, j: (i, j)),
        ),
        compiler_params=pltpu.CompilerParams(
            dimension_semantics=("parallel", "parallel")),
        cost_estimate=cost,
    )(x2d, bias)

    return out2d.reshape(N, C, H, W)


def _slice_add_ref(x1, x2, beta):
    """Pure-JAX reference mirroring the PyTorch forward."""
    del x2
    w = jnp.asarray(beta, dtype=jnp.float32).reshape(1, -1, 1, 1)
    return (x1.astype(jnp.float32) + w).astype(x1.dtype)


if __name__ == "__main__":
    key = jax.random.PRNGKey(0)
    k1, k2 = jax.random.split(key)
    N, C, H, W = 2, 4, 16, 16
    x1 = jax.random.normal(k1, (N, C, H, W), dtype=jnp.float32)
    x2 = jax.random.normal(k2, (N, C, 1, 1), dtype=jnp.float32)   # SE output (unused by forward)
    beta = np.linspace(-1.0, 1.0, C).astype(np.float32)           # module's beta parameter

    out = slice_add(x1, x2, beta)
    out = jax.block_until_ready(out)

    ref = _slice_add_ref(x1, x2, beta)
    assert out.shape == x1.shape
    np.testing.assert_allclose(np.asarray(out), np.asarray(ref), rtol=1e-6, atol=1e-6)
    print("KERNEL_OK")
</pallas_src>

<mosaic_0001>
module attributes {stable_mosaic.version = 11 : i64} {
  func.func @_slice_add_kernel(%arg0: i32, %arg1: i32, %arg2: memref<8x256xf32, #tpu.memory_space<vmem>>, %arg3: memref<8x1xf32, #tpu.memory_space<vmem>>, %arg4: memref<8x256xf32, #tpu.memory_space<vmem>>) attributes {dimension_semantics = [#tpu.dimension_semantics<parallel>, #tpu.dimension_semantics<parallel>], iteration_bounds = array<i64: 1, 1>, scalar_prefetch = 0 : i64, scratch_operands = 0 : i64, tpu.core_type = #tpu.core_type<tc>, window_params = [{transform_indices = @transform_0, window_bounds = array<i64: 8, 256>}, {transform_indices = @transform_1, window_bounds = array<i64: 8, 1>}, {transform_indices = @transform_2, window_bounds = array<i64: 8, 256>}]} {
    %c0 = arith.constant 0 : index
    %c0_0 = arith.constant 0 : index
    %0 = vector.load %arg2[%c0, %c0_0] : memref<8x256xf32, #tpu.memory_space<vmem>>, vector<8x256xf32>
    %c0_1 = arith.constant 0 : index
    %c0_2 = arith.constant 0 : index
    %1 = vector.load %arg3[%c0_1, %c0_2] : memref<8x1xf32, #tpu.memory_space<vmem>>, vector<8x1xf32>
    %2 = vector.broadcast %1 : vector<8x1xf32> to vector<8x256xf32>
    %3 = arith.addf %0, %2 : vector<8x256xf32>
    %c0_3 = arith.constant 0 : index
    %c0_4 = arith.constant 0 : index
    %4 = vector.load %arg4[%c0_3, %c0_4] : memref<8x256xf32, #tpu.memory_space<vmem>>, vector<8x256xf32>
    tpu.vector_store %arg4[%c0_3, %c0_4], %3 {strides = array<i32>} : memref<8x256xf32, #tpu.memory_space<vmem>>, vector<8x256xf32>,
    return
  }
  func.func @transform_0(%arg0: i32, %arg1: i32) -> (i32, i32) {
    %c0_i32 = arith.constant 0 : i32
    return %arg0, %arg1 : i32, i32
  }
  func.func @transform_1(%arg0: i32, %arg1: i32) -> (i32, i32) {
    %c0_i32 = arith.constant 0 : i32
    %c0_i32_0 = arith.constant 0 : i32
    return %arg0, %c0_i32 : i32, i32
  }
  func.func @transform_2(%arg0: i32, %arg1: i32) -> (i32, i32) {
    %c0_i32 = arith.constant 0 : i32
    return %arg0, %arg1 : i32, i32
  }
}

</mosaic_0001>

<bundles_post_ra>
// kernel: tpu_custom_call.1
= control target key start
LH: loop header
LB: loop body
LE: loop exit
PB: predicated region body
PF: predicated region fallthrough
CT: control target
= control target key end

     0   :  { %7 = vsyncpa [#allocation3], 0  ;;  %s148_s0 = inlined_call_operand.hbm [shape: f32[8,256], index: 0, kind: input, shape index: {}]   ;;  %s149_s1 = inlined_call_operand.vmem [shape: f32[8,1], index: 1, kind: input, shape index: {}]   ;;  %s150_s2 = inlined_call_operand.hbm [shape: f32[8,256], index: 2, kind: output, shape index: {}]  }
   0x1   :  { %8 = vsyncpa [#allocation4], 0  ;;  %s103_s9 = smov [#allocation2]   ;;  %s55_s13 = scalar_lea.hbm %s148_s0, 256 }
   0x2   :  { %s15_s10 = sshll.u32 %s103_s9, 4  ;;  %p56_p0 = scmp.ne.s32.totalorder %s148_s0, %s55_s13  ;;  %s16_s10 = int_to_ptr.vmem [resolvable:$true] %s15_s10 }
   0x3   :  { %p59_p1 = scmp.lt.u32.totalorder %s55_s13, %s148_s0 }
   0x5   :  { %p61_p2 = pnand %p59_p1, %p56_p0 }
   0x7   :  { %64 = shalt.err (!%p61_p2)
}
   0x8   :  { %s65_s18 = scalar_lea.vmem %s16_s10, 256  ;;  %p70_p4 = scmp.lt.s32.totalorder %s16_s10, %s16_s10 }
   0x9   :  { %p66_p3 = scmp.ne.s32.totalorder %s16_s10, %s65_s18  ;;  %p71_p5 = scmp.lt.s32.totalorder %s65_s18, %s65_s18 }
   0xb   :  { %p72_p6 = por %p71_p5, %p70_p4 }
   0xd   :  { %p73_p7 = pnand %p72_p6, %p66_p3 }
   0xf   :  { %76 = shalt.err (!%p73_p7)
}
  0x10   :  { %18 = dma.hbm_to_vmem [thread:$0]  %s148_s0, 256, %s16_s10, [#allocation3]  }
  0x11   :  { %99 = dma.done.wait [#allocation3], 256  }
  0x12   :  { %100 = vsyncadd [#allocation3], 4294967040  ;;  %v104_v0 = vmov 0   ;;  %v26_v1 = vld [vmem:[%s149_s1] sm:$0xff]  ;;  %v25_v3 = vld [vmem:[#allocation2 + $0x8] sm:$0xff]  ;;  %s105_s23 = smov [#allocation5]  }
  0x13   :  { %54 = vset.pattern.permute.xlu0 %v104_v0  ;;  %v24_v2 = vld [vmem:[#allocation2] sm:$0xff]  ;;  %s42_s24 = sshll.u32 %s105_s23, 4  ;;  %s43_s24 = int_to_ptr.vmem [resolvable:$true] %s42_s24 }
  0x14   :  { %29 = vperm.xlu0 %54, %v26_v1   ;;  %s77_s0 = scalar_lea.vmem %s43_s24, 256  ;;  %p82_p9 = scmp.lt.s32.totalorder %s43_s24, %s43_s24 }
  0x15   :  { %p78_p8 = scmp.ne.s32.totalorder %s43_s24, %s77_s0  ;;  %p83_p10 = scmp.lt.s32.totalorder %s77_s0, %s77_s0 }
  0x17   :  { %p84_p11 = por %p83_p10, %p82_p9 }
  0x19   :  { %p85_p12 = pnand %p84_p11, %p78_p8 }
  0x93   :  { %v30_v4 = vpop.permute.xlu0 %29 }
  0x94   :  { %v32_v5 = vadd.f32 %v30_v4, %v24_v2  ;;  %v33_v6 = vadd.f32 %v30_v4, %v25_v3 }
  0x96   :  { %34 = vst [vmem:[#allocation5] sm:$0xff] %v32_v5  ;;  %35 = vst [vmem:[#allocation5 + $0x8] sm:$0xff] %v33_v6 }
  0x97   :  { %88 = shalt.err (!%p85_p12)
}
  0x98   :  { %s89_s26 = scalar_lea.hbm %s150_s2, 256 }
  0x99   :  { %p90_p13 = scmp.ne.s32.totalorder %s150_s2, %s89_s26  ;;  %p93_p0 = scmp.lt.u32.totalorder %s89_s26, %s150_s2 }
  0x9b   :  { %p95_p1 = pnand %p93_p0, %p90_p13 }
  0x9d   :  { %98 = shalt.err (!%p95_p1)
}
  0x9e   :  { %45 = dma.vmem_to_hbm [thread:$0]  %s43_s24, 256, %s150_s2, [#allocation4]  }
  0x9f   :  { %101 = dma.done.wait [#allocation4], 256  }
  0xa0   :  { %102 = vsyncadd [#allocation4], 4294967040 }
  0xa1   :  { %49 = vsyncpa [#allocation3], 1 }
  0xa2   :  { %50 = vsyncpa [#allocation4], 1 }

</bundles_post_ra>
